<compile_context>
chip_gen: v6e
topology: v6e:2x2x1
jax: 0.10.0
libtpu: 0.0.40
codegen_flags: <defaults>
</compile_context>

<pallas_src>
import jax
import jax.numpy as jnp
import numpy as np
from jax import lax
from jax.experimental import pallas as pl
from jax.experimental.pallas import tpu as pltpu

K = 7          # largest re-param kernel
PAD = K // 2   # SAME padding of the fused 7x7 conv


# ----------------------------------------------------------------------------- kernel
def repblock_kernel(xt_ref, band_ref, bias_ref, o_ref):
    # xt_ref:   (1, 1, TH+2*PAD, Wp*Cin)  bf16  padded input rows for this (batch, H-tile)
    # band_ref: (K, Wp*Cin, W*Cout)       bf16  banded row-conv matrices, one per kh
    # bias_ref: (1, W*Cout)               f32   fused bias tiled over w
    # o_ref:    (1, TH, W*Cout)           f32
    TH = o_ref.shape[1]
    x = xt_ref[0, 0]                                   # (TH+2*PAD, Wp*Cin)
    acc = jnp.zeros((TH, o_ref.shape[2]), jnp.float32)
    for kh in range(band_ref.shape[0]):                # static unroll -> K MXU matmuls
        acc = acc + jnp.dot(x[kh:kh + TH, :], band_ref[kh],
                            preferred_element_type=jnp.float32)
    o_ref[0] = jnp.maximum(acc + bias_ref[0], 0.0)     # f32 epilogue, lane-dense store


# ------------------------------------------------------------------- re-parameterization
def _fold_conv_bn(w_oihw, gamma, beta, mean, var, eps=1e-5):
    """Fold Conv(no bias) -> BN(eval) into effective OIHW weight + bias."""
    scale = gamma / jnp.sqrt(var + eps)                         # (Cout,)
    return w_oihw * scale[:, None, None, None], beta - mean * scale


def fuse_repblock(params, eps=1e-5):
    """Fuse 7x7, 3x3 and skip-BN branches into one 7x7 HWIO kernel + bias (exact)."""
    w7, b7 = _fold_conv_bn(params["w7"], params["g7"], params["be7"],
                           params["m7"], params["v7"], eps)
    w3, b3 = _fold_conv_bn(params["w3"], params["g3"], params["be3"],
                           params["m3"], params["v3"], eps)
    cout, cin = w7.shape[0], w7.shape[1]
    pad3 = (K - w3.shape[-1]) // 2
    w3p = jnp.pad(w3, ((0, 0), (0, 0), (pad3, pad3), (pad3, pad3)))
    # skip BN as an identity 7x7 conv (groups=1, Cin==Cout)
    sscale = params["gs"] / jnp.sqrt(params["vs"] + eps)
    sshift = params["bes"] - params["ms"] * sscale
    idx = jnp.arange(cin)
    id_k = jnp.zeros((cout, cin, K, K), jnp.float32).at[idx, idx, K // 2, K // 2].set(sscale)
    wf = w7 + w3p + id_k                                        # OIHW
    bf = b7 + b3 + sshift                                       # (Cout,)
    return jnp.transpose(wf, (2, 3, 1, 0)), bf                  # HWIO, bias


def _build_band(wf_hwio, W, Wp):
    """Banded row matrices M: M[kh, w_in*Cin+ci, w*Cout+co] = Wf[kh, w_in-w, ci, co]."""
    cin, cout = wf_hwio.shape[2], wf_hwio.shape[3]
    base = jnp.pad(wf_hwio, ((0, 0), (0, Wp - K), (0, 0), (0, 0)))   # (K, Wp, Cin, Cout)
    band = jnp.stack([jnp.roll(base, w, axis=1) for w in range(W)], axis=3)
    return band.reshape(K, Wp * cin, W * cout)


# ----------------------------------------------------------------------------- wrapper
def repblock_forward(x_nchw, params, *, tile_h=8):
    """RepBlock forward (eval-mode BN) via the Pallas kernel. NCHW in / NCHW out."""
    x = jnp.transpose(x_nchw, (0, 2, 3, 1)).astype(jnp.float32)      # NHWC
    N, H, W, Cin = x.shape

    wf_hwio, bias = fuse_repblock(params)
    Cout = wf_hwio.shape[-1]
    assert Cin == Cout, "RepBlock skip branch requires in_channels == out_channels"

    Hp, Wp = H + 2 * PAD, W + 2 * PAD
    TH = tile_h if H % tile_h == 0 else H
    n_t = H // TH

    # constant operands (built once, wrapper-side glue)
    band = _build_band(wf_hwio, W, Wp).astype(jnp.bfloat16)          # (K, Wp*Cin, W*Cout)
    bias_row = jnp.tile(bias, W).reshape(1, W * Cout).astype(jnp.float32)

    # padded input rows, flattened to lane dim Wp*Cin, split into overlapping H-tiles
    xp = jnp.pad(x, ((0, 0), (PAD, PAD), (PAD, PAD), (0, 0))).reshape(N, Hp, Wp * Cin)
    xtiles = jnp.stack(
        [xp[:, t * TH: t * TH + TH + 2 * PAD, :] for t in range(n_t)], axis=1
    ).astype(jnp.bfloat16)                                           # (N, n_t, TH+6, Wp*Cin)

    out = pl.pallas_call(
        repblock_kernel,
        out_shape=jax.ShapeDtypeStruct((N, H, W * Cout), jnp.float32),
        grid_spec=pltpu.PrefetchScalarGridSpec(
            num_scalar_prefetch=0,
            grid=(N, n_t),
            in_specs=[
                pl.BlockSpec((1, 1, TH + 2 * PAD, Wp * Cin), lambda n, t: (n, t, 0, 0)),
                pl.BlockSpec((K, Wp * Cin, W * Cout), lambda n, t: (0, 0, 0)),
                pl.BlockSpec((1, W * Cout), lambda n, t: (0, 0)),
            ],
            out_specs=pl.BlockSpec((1, TH, W * Cout), lambda n, t: (n, t, 0)),
        ),
        compiler_params=pltpu.CompilerParams(
            dimension_semantics=("parallel", "parallel")),
    )(xtiles, band, bias_row)

    out = out.reshape(N, H, W, Cout)
    return jnp.transpose(out, (0, 3, 1, 2))                          # NHWC -> NCHW


# -------------------------------------------------------------------------- references
def reference_branches(x_nchw, params):
    """Pure-JAX f32 reference of the original three-branch module forward."""
    x = jnp.transpose(x_nchw, (0, 2, 3, 1)).astype(jnp.float32)

    def branch(w, g, be, m, v):
        scale = g / jnp.sqrt(v + 1e-5)
        w_hwio = jnp.transpose(w * scale[:, None, None, None], (2, 3, 1, 0))
        b = be - m * scale
        dn = lax.conv_dimension_numbers(x.shape, w_hwio.shape, ("NHWC", "HWIO", "NHWC"))
        return lax.conv_general_dilated(x, w_hwio, (1, 1), "SAME", dimension_numbers=dn,
                                        precision=lax.Precision.HIGHEST) + b

    y7 = branch(params["w7"], params["g7"], params["be7"], params["m7"], params["v7"])
    y3 = branch(params["w3"], params["g3"], params["be3"], params["m3"], params["v3"])
    sscale = params["gs"] / jnp.sqrt(params["vs"] + 1e-5)
    sshift = params["bes"] - params["ms"] * sscale
    y = jax.nn.relu(x * sscale + sshift + y7 + y3)
    return jnp.transpose(y, (0, 3, 1, 2))


def reference_fused(x_nchw, wf_hwio, bias, *, bf16_inputs):
    """Single fused 7x7 conv reference; optionally with bf16-rounded operands."""
    x = jnp.transpose(x_nchw, (0, 2, 3, 1)).astype(jnp.float32)
    w = wf_hwio
    if bf16_inputs:
        x = x.astype(jnp.bfloat16).astype(jnp.float32)
        w = w.astype(jnp.bfloat16).astype(jnp.float32)
    dn = lax.conv_dimension_numbers(x.shape, w.shape, ("NHWC", "HWIO", "NHWC"))
    y = lax.conv_general_dilated(x, w, (1, 1), "SAME", dimension_numbers=dn,
                                 precision=lax.Precision.HIGHEST) + bias
    return jnp.transpose(jax.nn.relu(y), (0, 3, 1, 2))


def init_params(key, cin, cout):
    ks = jax.random.split(key, 12)
    return {
        "w7": 0.1 * jax.random.normal(ks[0], (cout, cin, 7, 7), jnp.float32),
        "g7": 1.0 + 0.1 * jax.random.normal(ks[1], (cout,), jnp.float32),
        "be7": 0.1 * jax.random.normal(ks[2], (cout,), jnp.float32),
        "m7": 0.1 * jax.random.normal(ks[3], (cout,), jnp.float32),
        "v7": jnp.abs(jax.random.normal(ks[4], (cout,), jnp.float32)) + 0.5,
        "w3": 0.1 * jax.random.normal(ks[5], (cout, cin, 3, 3), jnp.float32),
        "g3": 1.0 + 0.1 * jax.random.normal(ks[6], (cout,), jnp.float32),
        "be3": 0.1 * jax.random.normal(ks[7], (cout,), jnp.float32),
        "m3": 0.1 * jax.random.normal(ks[8], (cout,), jnp.float32),
        "v3": jnp.abs(jax.random.normal(ks[9], (cout,), jnp.float32)) + 0.5,
        # skip-branch BatchNorm
        "gs": 1.0 + 0.1 * jax.random.normal(ks[10], (cin,), jnp.float32),
        "bes": 0.05 * jnp.ones((cin,), jnp.float32),
        "ms": 0.02 * jnp.ones((cin,), jnp.float32),
        "vs": jnp.abs(jax.random.normal(ks[11], (cin,), jnp.float32)) + 0.5,
    }


if __name__ == "__main__":
    key = jax.random.PRNGKey(0)
    k_x, k_p = jax.random.split(key)

    # in_channels == out_channels, stride=1, groups=1; W*C = 128 -> lane-dense output
    N, C, Hs, Ws = 2, 8, 16, 16
    x = jax.random.normal(k_x, (N, C, Hs, Ws), jnp.float32)
    params = init_params(k_p, C, C)

    y = jax.block_until_ready(repblock_forward(x, params))

    wf, bf = fuse_repblock(params)
    # 1) fusion math (single 7x7) == original three-branch forward, pure f32
    np.testing.assert_allclose(
        np.asarray(reference_fused(x, wf, bf, bf16_inputs=False)),
        np.asarray(reference_branches(x, params)), rtol=1e-4, atol=1e-4)
    # 2) kernel == fused conv with identical bf16-rounded operands (f32 accumulation)
    np.testing.assert_allclose(
        np.asarray(y),
        np.asarray(reference_fused(x, wf, bf, bf16_inputs=True)), rtol=1e-3, atol=1e-3)

    print("KERNEL_OK")
</pallas_src>

<mosaic_0001>
module attributes {stable_mosaic.version = 11 : i64} {
  func.func @repblock_kernel(%arg0: i32, %arg1: i32, %arg2: memref<1x1x14x176xbf16, #tpu.memory_space<vmem>>, %arg3: memref<7x176x128xbf16, #tpu.memory_space<vmem>>, %arg4: memref<1x128xf32, #tpu.memory_space<vmem>>, %arg5: memref<1x8x128xf32, #tpu.memory_space<vmem>>) attributes {dimension_semantics = [#tpu.dimension_semantics<parallel>, #tpu.dimension_semantics<parallel>], iteration_bounds = array<i64: 2, 2>, scalar_prefetch = 0 : i64, scratch_operands = 0 : i64, tpu.core_type = #tpu.core_type<tc>, window_params = [{transform_indices = @transform_0, window_bounds = array<i64: 1, 1, 14, 176>}, {pipeline_mode = #tpu.pipeline_mode<synchronous>, transform_indices = @transform_1, window_bounds = array<i64: 7, 176, 128>}, {pipeline_mode = #tpu.pipeline_mode<synchronous>, transform_indices = @transform_2, window_bounds = array<i64: 1, 128>}, {transform_indices = @transform_3, window_bounds = array<i64: 1, 8, 128>}]} {
    %c0 = arith.constant 0 : index
    %c0_0 = arith.constant 0 : index
    %c0_1 = arith.constant 0 : index
    %c0_2 = arith.constant 0 : index
    %0 = vector.load %arg2[%c0, %c0_0, %c0_1, %c0_2] : memref<1x1x14x176xbf16, #tpu.memory_space<vmem>>, vector<1x1x14x176xbf16>
    %1 = vector.shape_cast %0 : vector<1x1x14x176xbf16> to vector<14x176xbf16>
    %cst = arith.constant 0.000000e+00 : f32
    %2 = vector.broadcast %cst : f32 to vector<8x128xf32>
    %3 = vector.extract_strided_slice %1 {offsets = [0, 0], sizes = [8, 176], strides = [1, 1]} : vector<14x176xbf16> to vector<8x176xbf16>
    %c0_3 = arith.constant 0 : index
    %c0_4 = arith.constant 0 : index
    %c0_5 = arith.constant 0 : index
    %4 = vector.load %arg3[%c0_3, %c0_4, %c0_5] : memref<7x176x128xbf16, #tpu.memory_space<vmem>>, vector<1x176x128xbf16>
    %5 = vector.shape_cast %4 : vector<1x176x128xbf16> to vector<176x128xbf16>
    %cst_6 = arith.constant dense<0.000000e+00> : vector<8x128xf32>
    %6 = tpu.matmul %3, %5, %cst_6 {dimension_numbers = #tpu.dot_dimension_numbers<[1], [0], [0], [1], [0, 0, 1, 1], [], []>} : vector<8x176xbf16>, vector<176x128xbf16>, vector<8x128xf32> -> vector<8x128xf32>
    %7 = arith.addf %2, %6 : vector<8x128xf32>
    %8 = vector.extract_strided_slice %1 {offsets = [1, 0], sizes = [8, 176], strides = [1, 1]} : vector<14x176xbf16> to vector<8x176xbf16>
    %c1 = arith.constant 1 : index
    %c0_7 = arith.constant 0 : index
    %c0_8 = arith.constant 0 : index
    %9 = vector.load %arg3[%c1, %c0_7, %c0_8] : memref<7x176x128xbf16, #tpu.memory_space<vmem>>, vector<1x176x128xbf16>
    %10 = vector.shape_cast %9 : vector<1x176x128xbf16> to vector<176x128xbf16>
    %cst_9 = arith.constant dense<0.000000e+00> : vector<8x128xf32>
    %11 = tpu.matmul %8, %10, %cst_9 {dimension_numbers = #tpu.dot_dimension_numbers<[1], [0], [0], [1], [0, 0, 1, 1], [], []>} : vector<8x176xbf16>, vector<176x128xbf16>, vector<8x128xf32> -> vector<8x128xf32>
    %12 = arith.addf %7, %11 : vector<8x128xf32>
    %13 = vector.extract_strided_slice %1 {offsets = [2, 0], sizes = [8, 176], strides = [1, 1]} : vector<14x176xbf16> to vector<8x176xbf16>
    %c2 = arith.constant 2 : index
    %c0_10 = arith.constant 0 : index
    %c0_11 = arith.constant 0 : index
    %14 = vector.load %arg3[%c2, %c0_10, %c0_11] : memref<7x176x128xbf16, #tpu.memory_space<vmem>>, vector<1x176x128xbf16>
    %15 = vector.shape_cast %14 : vector<1x176x128xbf16> to vector<176x128xbf16>
    %cst_12 = arith.constant dense<0.000000e+00> : vector<8x128xf32>
    %16 = tpu.matmul %13, %15, %cst_12 {dimension_numbers = #tpu.dot_dimension_numbers<[1], [0], [0], [1], [0, 0, 1, 1], [], []>} : vector<8x176xbf16>, vector<176x128xbf16>, vector<8x128xf32> -> vector<8x128xf32>
    %17 = arith.addf %12, %16 : vector<8x128xf32>
    %18 = vector.extract_strided_slice %1 {offsets = [3, 0], sizes = [8, 176], strides = [1, 1]} : vector<14x176xbf16> to vector<8x176xbf16>
    %c3 = arith.constant 3 : index
    %c0_13 = arith.constant 0 : index
    %c0_14 = arith.constant 0 : index
    %19 = vector.load %arg3[%c3, %c0_13, %c0_14] : memref<7x176x128xbf16, #tpu.memory_space<vmem>>, vector<1x176x128xbf16>
    %20 = vector.shape_cast %19 : vector<1x176x128xbf16> to vector<176x128xbf16>
    %cst_15 = arith.constant dense<0.000000e+00> : vector<8x128xf32>
    %21 = tpu.matmul %18, %20, %cst_15 {dimension_numbers = #tpu.dot_dimension_numbers<[1], [0], [0], [1], [0, 0, 1, 1], [], []>} : vector<8x176xbf16>, vector<176x128xbf16>, vector<8x128xf32> -> vector<8x128xf32>
    %22 = arith.addf %17, %21 : vector<8x128xf32>
    %23 = vector.extract_strided_slice %1 {offsets = [4, 0], sizes = [8, 176], strides = [1, 1]} : vector<14x176xbf16> to vector<8x176xbf16>
    %c4 = arith.constant 4 : index
    %c0_16 = arith.constant 0 : index
    %c0_17 = arith.constant 0 : index
    %24 = vector.load %arg3[%c4, %c0_16, %c0_17] : memref<7x176x128xbf16, #tpu.memory_space<vmem>>, vector<1x176x128xbf16>
    %25 = vector.shape_cast %24 : vector<1x176x128xbf16> to vector<176x128xbf16>
    %cst_18 = arith.constant dense<0.000000e+00> : vector<8x128xf32>
    %26 = tpu.matmul %23, %25, %cst_18 {dimension_numbers = #tpu.dot_dimension_numbers<[1], [0], [0], [1], [0, 0, 1, 1], [], []>} : vector<8x176xbf16>, vector<176x128xbf16>, vector<8x128xf32> -> vector<8x128xf32>
    %27 = arith.addf %22, %26 : vector<8x128xf32>
    %28 = vector.extract_strided_slice %1 {offsets = [5, 0], sizes = [8, 176], strides = [1, 1]} : vector<14x176xbf16> to vector<8x176xbf16>
    %c5 = arith.constant 5 : index
    %c0_19 = arith.constant 0 : index
    %c0_20 = arith.constant 0 : index
    %29 = vector.load %arg3[%c5, %c0_19, %c0_20] : memref<7x176x128xbf16, #tpu.memory_space<vmem>>, vector<1x176x128xbf16>
    %30 = vector.shape_cast %29 : vector<1x176x128xbf16> to vector<176x128xbf16>
    %cst_21 = arith.constant dense<0.000000e+00> : vector<8x128xf32>
    %31 = tpu.matmul %28, %30, %cst_21 {dimension_numbers = #tpu.dot_dimension_numbers<[1], [0], [0], [1], [0, 0, 1, 1], [], []>} : vector<8x176xbf16>, vector<176x128xbf16>, vector<8x128xf32> -> vector<8x128xf32>
    %32 = arith.addf %27, %31 : vector<8x128xf32>
    %33 = vector.extract_strided_slice %1 {offsets = [6, 0], sizes = [8, 176], strides = [1, 1]} : vector<14x176xbf16> to vector<8x176xbf16>
    %c6 = arith.constant 6 : index
    %c0_22 = arith.constant 0 : index
    %c0_23 = arith.constant 0 : index
    %34 = vector.load %arg3[%c6, %c0_22, %c0_23] : memref<7x176x128xbf16, #tpu.memory_space<vmem>>, vector<1x176x128xbf16>
    %35 = vector.shape_cast %34 : vector<1x176x128xbf16> to vector<176x128xbf16>
    %cst_24 = arith.constant dense<0.000000e+00> : vector<8x128xf32>
    %36 = tpu.matmul %33, %35, %cst_24 {dimension_numbers = #tpu.dot_dimension_numbers<[1], [0], [0], [1], [0, 0, 1, 1], [], []>} : vector<8x176xbf16>, vector<176x128xbf16>, vector<8x128xf32> -> vector<8x128xf32>
    %37 = arith.addf %32, %36 : vector<8x128xf32>
    %c0_25 = arith.constant 0 : index
    %c0_26 = arith.constant 0 : index
    %38 = vector.load %arg4[%c0_25, %c0_26] : memref<1x128xf32, #tpu.memory_space<vmem>>, vector<1x128xf32>
    %39 = vector.shape_cast %38 : vector<1x128xf32> to vector<128xf32>
    %40 = vector.shape_cast %39 : vector<128xf32> to vector<1x128xf32>
    %41 = vector.broadcast %40 : vector<1x128xf32> to vector<8x128xf32>
    %42 = arith.addf %37, %41 : vector<8x128xf32>
    %cst_27 = arith.constant 0.000000e+00 : f32
    %43 = vector.broadcast %cst_27 : f32 to vector<8x128xf32>
    %44 = arith.maximumf %42, %43 : vector<8x128xf32>
    %c0_28 = arith.constant 0 : index
    %c0_29 = arith.constant 0 : index
    %c0_30 = arith.constant 0 : index
    %45 = vector.load %arg5[%c0_28, %c0_29, %c0_30] : memref<1x8x128xf32, #tpu.memory_space<vmem>>, vector<1x8x128xf32>
    %46 = vector.shape_cast %45 : vector<1x8x128xf32> to vector<8x128xf32>
    %47 = vector.shape_cast %44 : vector<8x128xf32> to vector<1x8x128xf32>
    tpu.vector_store %arg5[%c0_28, %c0_29, %c0_30], %47 {strides = array<i32>} : memref<1x8x128xf32, #tpu.memory_space<vmem>>, vector<1x8x128xf32>,
    return
  }
  func.func @transform_0(%arg0: i32, %arg1: i32) -> (i32, i32, i32, i32) {
    %c0_i32 = arith.constant 0 : i32
    %c0_i32_0 = arith.constant 0 : i32
    %c0_i32_1 = arith.constant 0 : i32
    return %arg0, %arg1, %c0_i32, %c0_i32_0 : i32, i32, i32, i32
  }
  func.func @transform_1(%arg0: i32, %arg1: i32) -> (i32, i32, i32) {
    %c0_i32 = arith.constant 0 : i32
    %c0_i32_0 = arith.constant 0 : i32
    %c0_i32_1 = arith.constant 0 : i32
    %c0_i32_2 = arith.constant 0 : i32
    return %c0_i32, %c0_i32_0, %c0_i32_1 : i32, i32, i32
  }
  func.func @transform_2(%arg0: i32, %arg1: i32) -> (i32, i32) {
    %c0_i32 = arith.constant 0 : i32
    %c0_i32_0 = arith.constant 0 : i32
    %c0_i32_1 = arith.constant 0 : i32
    return %c0_i32, %c0_i32_0 : i32, i32
  }
  func.func @transform_3(%arg0: i32, %arg1: i32) -> (i32, i32, i32) {
    %c0_i32 = arith.constant 0 : i32
    %c0_i32_0 = arith.constant 0 : i32
    return %arg0, %arg1, %c0_i32 : i32, i32, i32
  }
}

</mosaic_0001>

<bundles_post_ra>
// kernel: tpu_custom_call.1
= control target key start
LH: loop header
LB: loop body
LE: loop exit
PB: predicated region body
PF: predicated region fallthrough
CT: control target
= control target key end

     0   :  { %8 = vsyncpa [#allocation3], 0  ;;  %s2015_s0 = inlined_call_operand.vmem [shape: bf16[2,2,14,176], index: 0, kind: input, shape index: {}]   ;;  %s2016_s1 = inlined_call_operand.hbm [shape: bf16[7,176,128], index: 1, kind: input, shape index: {}]   ;;  %s2017_s2 = inlined_call_operand.vmem [shape: f32[1,128], index: 2, kind: input, shape index: {}]   ;;  %s2018_s3 = inlined_call_operand.hbm [shape: f32[2,16,128], index: 3, kind: output, shape index: {}]  }
   0x1   :  { %9 = vsyncpa [#allocation4], 0 }
   0x2   :  { %11 = vsyncpa [#allocation4 + $0x1], 0  ;;  %s1732_s12 = smov 0   ;;  %s1734_s13 = smov 0  }
   0x3   :  { %s1736_s14 = smov 0   ;;  %s1738_s15 = smov 0  }
   0x4   :  { %s1740_s16 = smov 0   ;;  %s1742_s17 = smov 0  }
   0x5   :  { %s1744_s18 = smov 0   ;;  %s1746_s19 = smov 0  }
   0x6 LB: > { %s1312_s20 = sadd.s32 4294967295, %s1705_s19   ;;  %s1313_s21 = sadd.s32 4294967294, %s1705_s19   ;;  %s1705_s19 = sphi %s1746_s19, %s17_s19   ;;  %s1701_s18 = sphi %s1744_s18, %s2030_s18   ;;  %s1697_s17 = sphi %s1742_s17, %s2029_s17   ;;  %s1693_s16 = sphi %s1740_s16, %s2028_s16   ;;  %s1689_s15 = sphi %s1738_s15, %s2027_s15   ;;  %s1685_s14 = sphi %s1736_s14, %s2026_s14   ;;  %s1681_s13 = sphi %s1734_s13, %s2025_s13   ;;  %s1677_s12 = sphi %s1732_s12, %s2024_s12  }
   0x7   : > { %s26_s22 = sadd.s32 1, %s1697_s17  ;;  %s29_s23 = sadd.s32 1, %s1701_s18 }
   0x8   : > { %p27_p0 = scmp.ge.s32.totalorder %s26_s22, 2  ;;  %s108_s24 = sadd.s32 1, %s1685_s14 }
   0x9   : > { %p118_p1 = scmp.ne.s32.totalorder %s1685_s14, %s1681_s13  ;;  %p119_p2 = scmp.eq.s32.totalorder %s1312_s20, 3 }
   0xa   : > { %s2032_s22 = smov (%p27_p0, %s26_s22), 0  ;;  %s2034_s23 = smov (!%p27_p0, %s29_s23), %s1701_s18 }
   0xb   : > { %s104_s25 = ssub.s32 %s1697_s17, %s2032_s22  ;;  %p1784_p3 = por %p119_p2, %p118_p1 }
   0xc   : > { %p31_p4 = scmp.ge.s32.totalorder %s2034_s23, 2  ;;  %p124_p5 = scmp.ne.s32.totalorder %s1681_s13, %s1677_s12 }
   0xd   : > { %p125_p6 = scmp.eq.s32.totalorder %s1313_s21, 3  ;;  %p1314_p7 = scmp.ge.s32.totalorder %s1705_s19, 1 }
   0xe   : > { %s2036_s23 = smov (%p31_p4, %s2034_s23), 0  ;;  %p132_p9 = scmp.lt.s32.totalorder %s1705_s19, 5 }
   0xf   : > { %p1793_p8 = por %p125_p6, %p124_p5  ;;  %s103_s28 = ssub.s32 %s1701_s18, %s2036_s23 }
  0x10   : > { %s105_s29 = sor.u32 %s104_s25, %s103_s28  ;;  %p1800_p10 = pnand %p1314_p7, %p132_p9 }
  0x11   : > { %p106_p11 = scmp.eq.s32.totalorder %s105_s29, 0  ;;  %p1804_p12 = scmp.eq.s32.totalorder %s1312_s20, 0 }
  0x12   : > { %p1423_p13 = pneg %p1800_p10  ;;  %s1707_s6 = smov [#allocation2]  }
  0x13   : > { %s1811_s5 = scalar_select %p106_p11, %s1685_s14, %s108_s24  }
  0x14   : > { %s144_s7 = sshll.u32 %s1707_s6, 4  ;;  %p1815_p0 = pnand %p1804_p12, %p1423_p13  ;;  %s145_s7 = int_to_ptr.vmem [resolvable:$true] %s144_s7 }
  0x15   : > { %s1594_s9 = scalar_lea.vmem %s145_s7, 9856  ;;  %p1602_p6 = scmp.lt.s32.totalorder %s145_s7, %s145_s7 }
  0x16   : > { %p1585_p1 = pneg %p1815_p0  ;;  %p1595_p2 = scmp.ne.s32.totalorder %s145_s7, %s1594_s9 }
  0x17   : > { %p1603_p7 = scmp.lt.s32.totalorder %s1594_s9, %s1594_s9 }
  0x18   : > { %p1597_p4 = pnand %p1595_p2, %p1585_p1 }
  0x19   : > { %p1604_p9 = por %p1603_p7, %p1602_p6 }
  0x1a   : > { %p1598_p5 = pneg %p1597_p4 }
  0x1c   : > { %p1605_p11 = pnand %p1604_p9, %p1598_p5 }
  0x1e   : > { %1608 = shalt.err (!%p1605_p11)
}
  0x1f   : > { %s1708_s10 = smov 64   ;;  %s1709_s11 = smov 4  }
  0x20   : > { %1426 = dma.hbm_to_vmem [thread:$0]  (!%p1815_p0), %s2016_s1, 9856, %s145_s7, [#allocation3], %s1708_s10, %s1708_s10, %s1709_s11  }
  0x21   : > { %175 = sbr.rel (%p1800_p10) target bundleno = 428 (0x1ac), region = 32 }
  0x26   : > { %1668 = dma.done.wait (%p1804_p12), [#allocation3], 9856  }
  0x27   : > { %1670 = vsyncadd (%p1804_p12), [#allocation3], 4294957440  ;;  %v1710_v0 = vmov 0   ;;  %v1502_v1 = vld [vmem:[#allocation2 + $0x90] sm:$0xff]   ;;  %v1503_v2 = vld [vmem:[#allocation2 + $0x38] sm:$0xff]   ;;  %p203_p13 = scmp.lt.s32.totalorder %s1693_s16, 1 }
  0x28   : > { %353 = vmatprep.subr.bf16.mxu0 %v1710_v0  ;;  %465 = vmatprep.subr.bf16.mxu1 %v1710_v0  ;;  %v1504_v3 = vld [vmem:[#allocation2 + $0x88] sm:$0xff]   ;;  %p205_p10 = scmp.lt.s32.totalorder %s1689_s15, 1  ;;  %v1505_v4 = vld [vmem:[#allocation2 + $0x30] sm:$0xff]   ;;  %v1506_v5 = vld [vmem:[#allocation2 + $0x80] sm:$0xff]   ;;  %vm349_vm0 = vcmask 392192   ;;  %s200_s9 = sand.u32 1, %s1681_s13  }
  0x29   : > { %354 = vmatpush1.bf16.msra.mxu0 %v1502_v1  ;;  %466 = vmatpush1.bf16.msra.mxu1 %v1503_v2  ;;  %s204_s24 = scalar_select %p203_p13, %s1693_s16, 1  ;;  %v1507_v6 = vld [vmem:[#allocation2 + $0x28] sm:$0xff]   ;;  %v1508_v7 = vld [vmem:[#allocation2 + $0x78] sm:$0xff]   ;;  %v1509_v8 = vld [vmem:[#allocation2 + $0x20] sm:$0xff]  }
  0x2a   : > { %355 = vmatprep.subr.bf16.mxu0 %v1710_v0  ;;  %467 = vmatprep.subr.bf16.mxu1 %v1710_v0  ;;  %s206_s25 = scalar_select %p205_p10, %s1689_s15, 1  ;;  %v1510_v9 = vld [vmem:[#allocation2 + $0x70] sm:$0xff]   ;;  %v1511_v10 = vld [vmem:[#allocation2 + $0x18] sm:$0xff]   ;;  %v1512_v11 = vld [vmem:[#allocation2 + $0x68] sm:$0xff]  }
  0x2b   : > { %s1321_s28 = sshll.u32 %s204_s24, 3  ;;  %v1513_v12 = vld [vmem:[#allocation2 + $0x10] sm:$0xff]   ;;  %v1514_v13 = vld [vmem:[#allocation2 + $0x60] sm:$0xff]   ;;  %v1515_v16 = vld [vmem:[#allocation2 + $0x8] sm:$0xff]   ;;  %s1319_s10 = sshll.u32 %s200_s9, 3 }
  0x2c   : > { %s1320_s29 = sshll.u32 %s206_s25, 2  ;;  %v1516_v21 = vld [vmem:[#allocation2 + $0x58] sm:$0xff]   ;;  %v1517_v22 = vld [vmem:[#allocation2] sm:$0xff]   ;;  %v1518_v26 = vld [vmem:[#allocation2 + $0xa8] sm:$0xff]   ;;  %s1413_s11 = sshll.u32 %s1693_s16, 1 }
  0x2d   : > { %356 = vmatpush1.bf16.msra.mxu0 %v1504_v3  ;;  %468 = vmatpush1.bf16.msra.mxu1 %v1505_v4  ;;  %s209_s30 = sadd.s32 %s1321_s28, %s1320_s29  ;;  %v1519_v27 = vld [vmem:[#allocation2 + $0x50] sm:$0xff]   ;;  %v1520_v29 = vld [vmem:[#allocation2 + $0xa0] sm:$0xff]   ;;  %v1521_v30 = vld [vmem:[#allocation2 + $0x48] sm:$0xff]   ;;  %s1215_s20 = sadd.s32 %s1689_s15, %s1413_s11 }
  0x2e   : > { %357 = vmatprep.subr.bf16.mxu0 %v1710_v0  ;;  %469 = vmatprep.subr.bf16.mxu1 %v1710_v0  ;;  %s1322_s4 = sshll.u32 %s209_s30, 2  ;;  %v1522_v33 = vld [vmem:[#allocation2 + $0x98] sm:$0xff]   ;;  %v1523_v35 = vld [vmem:[#allocation2 + $0x40] sm:$0xff]   ;;  %v1528_v42 = vld [vmem:[#allocation2 + $0xe8] sm:$0xff]   ;;  %s1414_s25 = sshll.u32 %s1215_s20, 7 }
  0x2f   : > { %s211_s8 = scalar_lea.vmem %s2015_s0, %s1322_s4  ;;  %v1529_v43 = vld [vmem:[#allocation2 + $0x140] sm:$0xff]   ;;  %v1531_v47 = vld [vmem:[#allocation2 + $0x138] sm:$0xff]   ;;  %v1533_v49 = vld [vmem:[#allocation2 + $0x130] sm:$0xff]   ;;  %s202_s28 = scalar_lea.vmem [#allocation5], %s1319_s10 }
  0x30   : > { %v213_v14 = vld [vmem:[%s211_s8] sm:$0xff]  ;;  %v214_v15 = vld [vmem:[%s211_s8 + $0x8] sm:$0x77]  ;;  %v1532_v48 = vld [vmem:[#allocation2 + $0xd8] sm:$0xff]   ;;  %s1219_s29 = sshll.u32 %s202_s28, 4  ;;  %s1969_s16 = scalar_lea.hbm %s2018_s3, %s1414_s25  ;;  %s1220_s29 = int_to_ptr.vmem [resolvable:$true] %s1219_s29 }
  0x31   : > { %358 = vmatpush1.bf16.msra.mxu0 %v1506_v5  ;;  %470 = vmatpush1.bf16.msra.mxu1 %v1507_v6  ;;  %v1852_v17 = vcombine.high %v213_v14, %v214_v15  ;;  %v1338_v18 = vcombine.high %v213_v14, %v213_v14  ;;  %v1865_v24 = vcombine.low %v213_v14, %v214_v15  ;;  %v1530_v46 = vld [vmem:[#allocation2 + $0xe0] sm:$0xff]   ;;  %v1534_v50 = vld [vmem:[#allocation2 + $0xd0] sm:$0xff]   ;;  %v1535_v51 = vld [vmem:[#allocation2 + $0x128] sm:$0xff]   ;;  %s1204_s15 = scalar_lea.sflag [#allocation4], %s200_s9  ;;  %s1609_s6 = scalar_lea.vmem %s1220_s29, 128 }
  0x32   : > { %359 = vmatprep.subr.bf16.mxu0 %v1710_v0  ;;  %471 = vmatprep.subr.bf16.mxu1 %v1710_v0  ;;  %v1337_v41 = vcombine.low %v213_v14, %v213_v14  ;;  %v1536_v52 = vld [vmem:[#allocation2 + $0xc8] sm:$0xff]   ;;  %v1537_v53 = vld [vmem:[#allocation2 + $0x120] sm:$0xff]   ;;  %v1539_v55 = vld [vmem:[#allocation2 + $0x118] sm:$0xff]   ;;  %p1610_p12 = scmp.ne.s32.totalorder %s1220_s29, %s1609_s6  ;;  %s1711_s7 = smov [#allocation5]  }
  0x33   : > { %v1856_v19 = vshrl.u32 %v1852_v17, 16  ;;  %v1859_v20 = vshll.u32 %v1852_v17, 16  ;;  %1350 = vmatprep.mubr.msk.bf16.mxu1 %vm349_vm0, %v1338_v18  ;;  %v1872_v28 = vshll.u32 %v1865_v24, 16  ;;  %v1877_v31 = vshrl.u32 %v1865_v24, 16  ;;  %v1538_v54 = vld [vmem:[#allocation2 + $0xc0] sm:$0xff]   ;;  %v1540_v56 = vld [vmem:[#allocation2 + $0xb8] sm:$0xff]  }
  0x34   : > { %v529_v44 = vrot.slane %v1852_v17, 1  ;;  %v1541_v57 = vld [vmem:[#allocation2 + $0x110] sm:$0xff]   ;;  %v1543_v59 = vld [vmem:[#allocation2 + $0x108] sm:$0xff]   ;;  %v1544_v60 = vld [vmem:[#allocation2 + $0x100] sm:$0xff]   ;;  %v528_v5 = vrot.slane %v1865_v24, 1  ;;  %p1611_p0 = pnand %p1610_p12, %p1784_p3  ;;  %s1613_s8 = sshll.u32 %s1711_s7, 4  ;;  %s1614_s8 = int_to_ptr.vmem [resolvable:$false] %s1613_s8 }
  0x35   : > { %360 = vmatpush1.bf16.msra.mxu0 %v1508_v7  ;;  %472 = vmatpush1.bf16.msra.mxu1 %v1509_v8  ;;  %v280_v23 = vrot.slane %v1859_v20, 1  ;;  %v273_v32 = vrot.slane %v1872_v28, 1  ;;  %v940_v34 = vrot.slane %v1877_v31, 2  ;;  %v941_v36 = vrot.slane %v1872_v28, 3  ;;  %v1542_v58 = vld [vmem:[#allocation2 + $0xb0] sm:$0xff]   ;;  %v1545_v61 = vld [vmem:[#allocation2 + $0x158] sm:$0xff]   ;;  %p1616_p2 = scmp.lt.s32.totalorder %s1220_s29, %s1614_s8 }
  0x36   : > { %361 = vmatprep.subr.bf16.mxu0 %v1710_v0  ;;  %473 = vmatprep.subr.bf16.mxu1 %v1710_v0  ;;  %v667_v38 = vrot.slane %v1856_v19, 1  ;;  %v668_v39 = vrot.slane %v1859_v20, 2  ;;  %v1546_v62 = vld [vmem:[#allocation2 + $0xf8] sm:$0xff]   ;;  %v1547_v63 = vld [vmem:[#allocation2 + $0x150] sm:$0xff]   ;;  %v664_v2 = vrot.slane %v1877_v31, 1  ;;  %v665_v3 = vrot.slane %v1872_v28, 2  ;;  %p1612_p1 = pneg %p1611_p0 }
  0x37   : > { %v281_v25 = vor.u32 %v280_v23, %v1856_v19  ;;  %v274_v37 = vor.u32 %v273_v32, %v1877_v31  ;;  %v1887_v40 = vor.u32 %v941_v36, %v940_v34  ;;  %v1548_v1 = vld [vmem:[#allocation2 + $0xf0] sm:$0xff]   ;;  %v1549_v4 = vld [vmem:[#allocation2 + $0x148] sm:$0xff]   ;;  %v943_v6 = vrot.slane %v1856_v19, 2  ;;  %v1550_v8 = vld [vmem:[#allocation2 + $0x198] sm:$0xff]   ;;  %s1615_s10 = scalar_lea.vmem %s1614_s8, 256 }
  0x38   : > { %v669_v45 = vor.u32 %v668_v39, %v667_v38  ;;  %v944_v7 = vrot.slane %v1859_v20, 3  ;;  %v1553_v14 = vld [vmem:[#allocation2 + $0x1e8] sm:$0xff]   ;;  %v1556_v18 = vld [vmem:[#allocation2 + $0x180] sm:$0xff]   ;;  %v1557_v19 = vld [vmem:[#allocation2 + $0x1d8] sm:$0xff]   ;;  %p1617_p4 = scmp.lt.s32.totalorder %s1615_s10, %s1609_s6 }
  0x39   : > { %362 = vmatpush1.bf16.msra.mxu0 %v1510_v9  ;;  %474 = vmatpush1.bf16.msra.mxu1 %v1511_v10  ;;  %v666_v9 = vor.u32 %v665_v3, %v664_v2  ;;  %v1551_v10 = vld [vmem:[#allocation2 + $0x1f0] sm:$0xff]   ;;  %v1554_v15 = vld [vmem:[#allocation2 + $0x188] sm:$0xff]   ;;  %v1558_v20 = vld [vmem:[#allocation2 + $0x178] sm:$0xff]  }
  0x3a   : > { %363 = vmatprep.subr.bf16.mxu0 %v1710_v0  ;;  %475 = vmatprep.subr.bf16.mxu1 %v1710_v0  ;;  %v1561_v23 = vld [vmem:[#allocation2 + $0x1c8] sm:$0xff]   ;;  %v1565_v28 = vld [vmem:[#allocation2 + $0x1b8] sm:$0xff]   ;;  %v1569_v32 = vld [vmem:[#allocation2 + $0x200] sm:$0xff]   ;;  %p1618_p5 = por %p1617_p4, %p1616_p2 }
  0x3b   : > { %1336 = vmatprep.mubr.msk.bf16.mxu0 %vm349_vm0, %v281_v25  ;;  %v1562_v25 = vld [vmem:[#allocation2 + $0x168] sm:$0xff]   ;;  %v1571_v34 = vld [vmem:[#allocation2 + $0x1f8] sm:$0xff]   ;;  %v1573_v38 = vld [vmem:[#allocation2 + $0x240] sm:$0xff]  }
  0x3c   : > { %v1568_v31 = vld [vmem:[#allocation2 + $0x1a8] sm:$0xff]   ;;  %v1574_v39 = vld [vmem:[#allocation2 + $0x238] sm:$0xff]   ;;  %p1619_p6 = pnand %p1618_p5, %p1612_p1 }
  0x3d   : > { %364 = vmatpush1.bf16.msra.mxu0 %v1512_v11  ;;  %476 = vmatpush1.bf16.msra.mxu1 %v1513_v12  ;;  %v805_v11 = vrot.slane %v1852_v17, 2  ;;  %v945_v12 = vor.u32 %v944_v7, %v943_v6  ;;  %v1572_v36 = vld [vmem:[#allocation2 + $0x248] sm:$0xff]  }
  0x3e   : > { %365 = vmatprep.subr.bf16.mxu0 %v1710_v0  ;;  %477 = vmatprep.subr.bf16.mxu1 %v1710_v0 }
  0x41   : > { %366 = vmatpush1.bf16.msra.mxu0 %v1514_v13  ;;  %478 = vmatpush1.bf16.msra.mxu1 %v1515_v16  ;;  %v1552_v13 = vld [vmem:[#allocation2 + $0x190] sm:$0xff]   ;;  %v1555_v16 = vld [vmem:[#allocation2 + $0x1e0] sm:$0xff]  }
  0x42   : > { %367 = vmatprep.subr.bf16.mxu0 %v1710_v0  ;;  %479 = vmatprep.subr.bf16.mxu1 %v1710_v0 }
  0x45   : > { %368 = vmatpush1.bf16.msra.mxu0 %v1516_v21  ;;  %480 = vmatpush1.bf16.msra.mxu1 %v1517_v22  ;;  %v1559_v21 = vld [vmem:[#allocation2 + $0x1d0] sm:$0xff]  }
  0x46   : > { %379 = vmatprep.subr.bf16.mxu0 %v1710_v0  ;;  %491 = vmatprep.subr.bf16.mxu1 %v1710_v0  ;;  %v1560_v22 = vld [vmem:[#allocation2 + $0x170] sm:$0xff]  }
  0x49   : > { %380 = vmatpush2.bf16.msra.mxu0 %v1518_v26  ;;  %492 = vmatpush2.bf16.msra.mxu1 %v1519_v27  ;;  %v1563_v26 = vld [vmem:[#allocation2 + $0x1c0] sm:$0xff]  }
  0x4a   : > { %381 = vmatprep.subr.bf16.mxu0 %v1710_v0  ;;  %493 = vmatprep.subr.bf16.mxu1 %v1710_v0  ;;  %v1564_v27 = vld [vmem:[#allocation2 + $0x160] sm:$0xff]  }
  0x4d   : > { %382 = vmatpush2.bf16.msra.mxu0 %v1520_v29  ;;  %494 = vmatpush2.bf16.msra.mxu1 %v1521_v30  ;;  %v1566_v29 = vld [vmem:[#allocation2 + $0x1b0] sm:$0xff]   ;;  %v1567_v30 = vld [vmem:[#allocation2 + $0x208] sm:$0xff]  }
  0x4e   : > { %383 = vmatprep.subr.bf16.mxu0 %v1710_v0  ;;  %495 = vmatprep.subr.bf16.mxu1 %v1710_v0 }
  0x51   : > { %384 = vmatpush2.bf16.msra.mxu0 %v1522_v33  ;;  %496 = vmatpush2.bf16.msra.mxu1 %v1523_v35  ;;  %v1570_v33 = vld [vmem:[#allocation2 + $0x1a0] sm:$0xff]   ;;  %v804_v35 = vrot.slane %v1865_v24, 2 }
  0x52   : > { %600 = vmatprep.subr.bf16.mxu0 %v1710_v0  ;;  %740 = vmatprep.subr.bf16.mxu1 %v1710_v0 }
  0x54   : > { %386 = vmatmul.mubr.bf16.vlgmr.msra.gmra.mxu0 %v274_v37  ;;  %498 = vmatmul.mubr.bf16.vlgmr.msra.gmra.mxu1 %v1337_v41  ;;  %v1081_v37 = vrot.slane %v1852_v17, 3  ;;  %v1575_v41 = vld [vmem:[#allocation2 + $0x230] sm:$0xff]   ;;  %v1577_v17 = vld [vmem:[#allocation2 + $0x220] sm:$0xff]  }
  0x55   : > { %601 = vmatpush1.bf16.msra.mxu0 %v1528_v42  ;;  %741 = vmatpush1.bf16.msra.mxu1 %v1529_v43  ;;  %v1576_v42 = vld [vmem:[#allocation2 + $0x228] sm:$0xff]   ;;  %v1579_v43 = vld [vmem:[#allocation2 + $0x210] sm:$0xff]  }
  0x56   : > { %602 = vmatprep.subr.bf16.mxu0 %v1710_v0  ;;  %742 = vmatprep.subr.bf16.mxu1 %v1710_v0 }
  0x57   : > { %1362 = vmatprep.mubr.msk.bf16.mxu0 %vm349_vm0, %v529_v44  ;;  %1374 = vmatprep.mubr.msk.bf16.mxu1 %vm349_vm0, %v669_v45  ;;  %v1580_v44 = vld [vmem:[#allocation2 + $0x260] sm:$0xff]   ;;  %v1581_v45 = vld [vmem:[#allocation2 + $0x258] sm:$0xff]  }
  0x59   : > { %603 = vmatpush1.bf16.msra.mxu0 %v1530_v46  ;;  %743 = vmatpush1.bf16.msra.mxu1 %v1531_v47  ;;  %v1582_v46 = vld [vmem:[#allocation2 + $0x250] sm:$0xff]   ;;  %v1080_v47 = vrot.slane %v1865_v24, 3 }
  0x5a   : > { %604 = vmatprep.subr.bf16.mxu0 %v1710_v0  ;;  %744 = vmatprep.subr.bf16.mxu1 %v1710_v0 }
  0x5d   : > { %605 = vmatpush1.bf16.msra.mxu0 %v1532_v48  ;;  %745 = vmatpush1.bf16.msra.mxu1 %v1533_v49 }
  0x5e   : > { %606 = vmatprep.subr.bf16.mxu0 %v1710_v0  ;;  %746 = vmatprep.subr.bf16.mxu1 %v1710_v0 }
  0x61   : > { %607 = vmatpush1.bf16.msra.mxu0 %v1534_v50  ;;  %747 = vmatpush1.bf16.msra.mxu1 %v1535_v51 }
  0x62   : > { %608 = vmatprep.subr.bf16.mxu0 %v1710_v0  ;;  %748 = vmatprep.subr.bf16.mxu1 %v1710_v0 }
  0x65   : > { %609 = vmatpush1.bf16.msra.mxu0 %v1536_v52  ;;  %749 = vmatpush1.bf16.msra.mxu1 %v1537_v53 }
  0x66   : > { %610 = vmatprep.subr.bf16.mxu0 %v1710_v0  ;;  %750 = vmatprep.subr.bf16.mxu1 %v1710_v0 }
  0x69   : > { %611 = vmatpush1.bf16.msra.mxu0 %v1538_v54  ;;  %751 = vmatpush1.bf16.msra.mxu1 %v1539_v55 }
  0x6a   : > { %612 = vmatprep.subr.bf16.mxu0 %v1710_v0  ;;  %752 = vmatprep.subr.bf16.mxu1 %v1710_v0 }
  0x6d   : > { %613 = vmatpush1.bf16.msra.mxu0 %v1540_v56  ;;  %753 = vmatpush1.bf16.msra.mxu1 %v1541_v57 }
  0x6e   : > { %614 = vmatprep.subr.bf16.mxu0 %v1710_v0  ;;  %754 = vmatprep.subr.bf16.mxu1 %v1710_v0 }
  0x71   : > { %615 = vmatpush1.bf16.msra.mxu0 %v1542_v58  ;;  %755 = vmatpush1.bf16.msra.mxu1 %v1543_v59 }
  0x72   : > { %626 = vmatprep.subr.bf16.mxu0 %v1710_v0  ;;  %766 = vmatprep.subr.bf16.mxu1 %v1710_v0 }
  0x75   : > { %627 = vmatpush2.bf16.msra.mxu0 %v1544_v60  ;;  %767 = vmatpush2.bf16.msra.mxu1 %v1545_v61 }
  0x76   : > { %628 = vmatprep.subr.bf16.mxu0 %v1710_v0  ;;  %768 = vmatprep.subr.bf16.mxu1 %v1710_v0 }
  0x79   : > { %629 = vmatpush2.bf16.msra.mxu0 %v1546_v62  ;;  %769 = vmatpush2.bf16.msra.mxu1 %v1547_v63 }
  0x7a   : > { %630 = vmatprep.subr.bf16.mxu0 %v1710_v0  ;;  %770 = vmatprep.subr.bf16.mxu1 %v1710_v0 }
  0x7d   : > { %631 = vmatpush2.bf16.msra.mxu0 %v1548_v1  ;;  %771 = vmatpush2.bf16.msra.mxu1 %v1549_v4 }
  0x7e   : > { %876 = vmatprep.subr.bf16.mxu0 %v1710_v0  ;;  %1016 = vmatprep.subr.bf16.mxu1 %v1710_v0 }
  0x80   : > { %633 = vmatmul.mubr.bf16.vlgmr.msra.gmra.mxu0 %v528_v5  ;;  %773 = vmatmul.mubr.bf16.vlgmr.msra.gmra.mxu1 %v666_v9 }
  0x81   : > { %877 = vmatpush1.bf16.msra.mxu0 %v1550_v8  ;;  %1017 = vmatpush1.bf16.msra.mxu1 %v1551_v10 }
  0x82   : > { %878 = vmatprep.subr.bf16.mxu0 %v1710_v0  ;;  %1018 = vmatprep.subr.bf16.mxu1 %v1710_v0 }
  0x83   : > { %1386 = vmatprep.mubr.msk.bf16.mxu0 %vm349_vm0, %v805_v11  ;;  %1398 = vmatprep.mubr.msk.bf16.mxu1 %vm349_vm0, %v945_v12 }
  0x85   : > { %879 = vmatpush1.bf16.msra.mxu0 %v1552_v13  ;;  %1019 = vmatpush1.bf16.msra.mxu1 %v1553_v14  ;;  %v1411_v13 = vld [vmem:[%s2017_s2] ss:$0 sm:$0xff] }
  0x86   : > { %880 = vmatprep.subr.bf16.mxu0 %v1710_v0  ;;  %1020 = vmatprep.subr.bf16.mxu1 %v1710_v0 }
  0x89   : > { %881 = vmatpush1.bf16.msra.mxu0 %v1554_v15  ;;  %1021 = vmatpush1.bf16.msra.mxu1 %v1555_v16 }
  0x8a   : > { %882 = vmatprep.subr.bf16.mxu0 %v1710_v0  ;;  %1022 = vmatprep.subr.bf16.mxu1 %v1710_v0 }
  0x8d   : > { %883 = vmatpush1.bf16.msra.mxu0 %v1556_v18  ;;  %1023 = vmatpush1.bf16.msra.mxu1 %v1557_v19 }
  0x8e   : > { %884 = vmatprep.subr.bf16.mxu0 %v1710_v0  ;;  %1024 = vmatprep.subr.bf16.mxu1 %v1710_v0 }
  0x91   : > { %885 = vmatpush1.bf16.msra.mxu0 %v1558_v20  ;;  %1025 = vmatpush1.bf16.msra.mxu1 %v1559_v21 }
  0x92   : > { %886 = vmatprep.subr.bf16.mxu0 %v1710_v0  ;;  %1026 = vmatprep.subr.bf16.mxu1 %v1710_v0 }
  0x95   : > { %887 = vmatpush1.bf16.msra.mxu0 %v1560_v22  ;;  %1027 = vmatpush1.bf16.msra.mxu1 %v1561_v23 }
  0x96   : > { %888 = vmatprep.subr.bf16.mxu0 %v1710_v0  ;;  %1028 = vmatprep.subr.bf16.mxu1 %v1710_v0 }
  0x99   : > { %889 = vmatpush1.bf16.msra.mxu0 %v1562_v25  ;;  %1029 = vmatpush1.bf16.msra.mxu1 %v1563_v26 }
  0x9a   : > { %890 = vmatprep.subr.bf16.mxu0 %v1710_v0  ;;  %1030 = vmatprep.subr.bf16.mxu1 %v1710_v0 }
  0x9d   : > { %891 = vmatpush1.bf16.msra.mxu0 %v1564_v27  ;;  %1031 = vmatpush1.bf16.msra.mxu1 %v1565_v28 }
  0x9e   : > { %902 = vmatprep.subr.bf16.mxu0 %v1710_v0  ;;  %1042 = vmatprep.subr.bf16.mxu1 %v1710_v0 }
  0xa1   : > { %903 = vmatpush2.bf16.msra.mxu0 %v1566_v29  ;;  %1043 = vmatpush2.bf16.msra.mxu1 %v1567_v30 }
  0xa2   : > { %904 = vmatprep.subr.bf16.mxu0 %v1710_v0  ;;  %1044 = vmatprep.subr.bf16.mxu1 %v1710_v0 }
  0xa5   : > { %905 = vmatpush2.bf16.msra.mxu0 %v1568_v31  ;;  %1045 = vmatpush2.bf16.msra.mxu1 %v1569_v32 }
  0xa6   : > { %906 = vmatprep.subr.bf16.mxu0 %v1710_v0  ;;  %1046 = vmatprep.subr.bf16.mxu1 %v1710_v0 }
  0xa9   : > { %907 = vmatpush2.bf16.msra.mxu0 %v1570_v33  ;;  %1047 = vmatpush2.bf16.msra.mxu1 %v1571_v34 }
  0xaa   : > { %1152 = vmatprep.subr.bf16.mxu0 %v1710_v0 }
  0xac   : > { %909 = vmatmul.mubr.bf16.vlgmr.msra.gmra.mxu0 %v804_v35  ;;  %1049 = vmatmul.mubr.bf16.vlgmr.msra.gmra.mxu1 %v1887_v40  ;;  %v1578_v40 = vld [vmem:[#allocation2 + $0x218] sm:$0xff]  }
  0xad   : > { %1153 = vmatpush1.bf16.msra.mxu0 %v1572_v36  ;;  %1410 = vmatprep.mubr.msk.bf16.mxu0 %vm349_vm0, %v1081_v37 }
  0xae   : > { %1154 = vmatprep.subr.bf16.mxu0 %v1710_v0 }
  0xb1   : > { %1155 = vmatpush1.bf16.msra.mxu0 %v1573_v38 }
  0xb2   : > { %1156 = vmatprep.subr.bf16.mxu0 %v1710_v0 }
  0xb5   : > { %1157 = vmatpush1.bf16.msra.mxu0 %v1574_v39 }
  0xb6   : > { %1158 = vmatprep.subr.bf16.mxu0 %v1710_v0 }
  0xb9   : > { %1159 = vmatpush1.bf16.msra.mxu0 %v1575_v41 }
  0xba   : > { %1160 = vmatprep.subr.bf16.mxu0 %v1710_v0 }
  0xbd   : > { %1161 = vmatpush1.bf16.msra.mxu0 %v1576_v42 }
  0xbe   : > { %1162 = vmatprep.subr.bf16.mxu0 %v1710_v0 }
  0xc1   : > { %1163 = vmatpush1.bf16.msra.mxu0 %v1577_v17 }
  0xc2   : > { %1164 = vmatprep.subr.bf16.mxu0 %v1710_v0 }
  0xc5   : > { %1165 = vmatpush1.bf16.msra.mxu0 %v1578_v40 }
  0xc6   : > { %1166 = vmatprep.subr.bf16.mxu0 %v1710_v0 }
  0xc9   : > { %1167 = vmatpush1.bf16.msra.mxu0 %v1579_v43 }
  0xca   : > { %1178 = vmatprep.subr.bf16.mxu0 %v1710_v0 }
  0xcd   : > { %1179 = vmatpush2.bf16.msra.mxu0 %v1580_v44 }
  0xce   : > { %1180 = vmatprep.subr.bf16.mxu0 %v1710_v0 }
  0xd1   : > { %1181 = vmatpush2.bf16.msra.mxu0 %v1581_v45 }
  0xd2   : > { %1182 = vmatprep.subr.bf16.mxu0 %v1710_v0 }
  0xd5   : > { %1183 = vmatpush2.bf16.msra.mxu0 %v1582_v46 }
  0xd8   : > { %1185 = vmatmul.mubr.bf16.vlgmr.msra.gmra.mxu0 %v1080_v47 }
 0x114   : > { %v387_v48 = vpop.f32.mrf.mxu0  ;;  %v499_v49 = vpop.f32.mrf.mxu1 }
 0x115   : > { %v500_v50 = vadd.f32 %v499_v49, %v387_v48 }
 0x116   : > { %v389_v51 = vpop.f32.mrf.mxu0  ;;  %v501_v52 = vpop.f32.mrf.mxu1 }
 0x118   : > { %v390_v53 = vpop.f32.mrf.mxu0  ;;  %v502_v54 = vpop.f32.mrf.mxu1 }
 0x11a   : > { %v391_v55 = vpop.f32.mrf.mxu0  ;;  %v503_v56 = vpop.f32.mrf.mxu1 }
 0x140   : > { %v634_v57 = vpop.f32.mrf.mxu0  ;;  %v774_v59 = vpop.f32.mrf.mxu1 }
 0x141   : > { %v640_v58 = vadd.f32 %v634_v57, %v500_v50 }
 0x142   : > { %v636_v60 = vpop.f32.mrf.mxu0  ;;  %v776_v0 = vpop.f32.mrf.mxu1 }
 0x143   : > { %v780_v61 = vadd.f32 %v774_v59, %v640_v58 }
 0x144   : > { %v637_v24 = vpop.f32.mrf.mxu0  ;;  %v777_v62 = vpop.f32.mrf.mxu1 }
 0x146   : > { %v638_v63 = vpop.f32.mrf.mxu0  ;;  %v778_v1 = vpop.f32.mrf.mxu1 }
 0x16c   : > { %v910_v2 = vpop.f32.mrf.mxu0  ;;  %v1050_v3 = vpop.f32.mrf.mxu1 }
 0x16d   : > { %v916_v10 = vadd.f32 %v910_v2, %v780_v61 }
 0x16e   : > { %v912_v4 = vpop.f32.mrf.mxu0  ;;  %v1052_v5 = vpop.f32.mrf.mxu1 }
 0x16f   : > { %v1056_v11 = vadd.f32 %v1050_v3, %v916_v10 }
 0x170   : > { %v913_v6 = vpop.f32.mrf.mxu0  ;;  %v1053_v7 = vpop.f32.mrf.mxu1 }
 0x172   : > { %v914_v8 = vpop.f32.mrf.mxu0  ;;  %v1054_v9 = vpop.f32.mrf.mxu1 }
 0x198   : > { %v1186_v12 = vpop.f32.mrf.mxu0 }
 0x199   : > { %v1192_v14 = vadd.f32 %v1186_v12, %v1056_v11 }
 0x19a   : > { %v1188_v15 = vpop.f32.mrf.mxu0 }
 0x19b   : > { %v1200_v16 = vadd.f32 %v1411_v13, %v1192_v14 }
 0x19c   : > { %v1189_v18 = vpop.f32.mrf.mxu0 }
 0x19d   : > { %v1201_v19 = vmax.f32 %v1200_v16, 0.0 }
 0x19e   : > { %v1190_v20 = vpop.f32.mrf.mxu0 }
 0x19f   : > { %1202 = vst [vmem:[%s202_s28] sm:$0xff] %v1201_v19 }
 0x1a0   : > { %1622 = shalt.err (!%p1619_p6)
}
 0x1a1   : > { %s1623_s11 = scalar_lea.hbm %s1969_s16, 128  ;;  %s1627_s21 = scalar_lea.hbm %s2018_s3, 512 }
 0x1a2   : > { %p1624_p7 = scmp.ne.s32.totalorder %s1969_s16, %s1623_s11  ;;  %p1628_p13 = scmp.lt.s32.totalorder %s1969_s16, %s2018_s3 }
 0x1a3   : > { %p1629_p10 = scmp.lt.s32.totalorder %s1627_s21, %s1623_s11 }
 0x1a4   : > { %p1625_p9 = pnand %p1624_p7, %p1784_p3 }
 0x1a5   : > { %p1630_p12 = por %p1629_p10, %p1628_p13 }
 0x1a6   : > { %p1626_p11 = pneg %p1625_p9 }
 0x1a8   : > { %p1631_p0 = pnand %p1630_p12, %p1626_p11 }
 0x1aa   : > { %1634 = shalt.err (!%p1631_p0)
}
 0x1ab   : > { %1421 = dma.vmem_to_hbm [thread:$0]  (%p1784_p3), %s1220_s29, 128, %s1969_s16, %s1204_s15  }
 0x1ac PF: > { %p1433_p1 = scmp.ge.s32.totalorder %s1705_s19, 2  ;;  %s1231_s28 = sand.u32 1, %s1677_s12  }
 0x1ad   : > { %s1232_s30 = scalar_lea.sflag [#allocation4], %s1231_s28 }
 0x1ae   : > { %p1428_p2 = pnand %p1433_p1, %p1793_p8 }
 0x1b0   : > { %p1429_p4 = pneg %p1428_p2 }
 0x1b2   : > { %1672 = dma.done.wait (%p1429_p4), %s1232_s30, 128  }
 0x1b3   : > { %1674 = vsyncadd (%p1429_p4), %s1232_s30, 4294967168  ;;  %s17_s19 = sadd.s32 1, %s1705_s19   ;;  %s2024_s12 = smov %s1681_s13 }
 0x1b4   : > { %p14_p5 = scmp.ge.s32.totalorder %s17_s19, 6   ;;  %s2025_s13 = smov %s1685_s14 }
 0x1b5   : > { %s2026_s14 = smov %s1811_s5  ;;  %s2027_s15 = smov %s1697_s17 }
 0x1b6   : > { %s2028_s16 = smov %s1701_s18  ;;  %s2029_s17 = smov %s2032_s22 }
 0x1b7   : > { %s2030_s18 = smov %s2036_s23  ;;  %16 = sbr.rel (!%p14_p5) target bundleno = 6 (0x6), region = 78 }
 0x1bc   :  { %1237 = vsyncpa [#allocation3], 1 }
 0x1bd   :  { %1239 = vsyncpa [#allocation3 + $0x1], 1 }
 0x1be   :  { %1240 = vsyncpa [#allocation4], 1 }
 0x1bf   :  { %1242 = vsyncpa [#allocation4 + $0x1], 1 }

</bundles_post_ra>
